<compile_context>
chip_gen: v5e
topology: v5e:2x2
jax: 0.10.0
libtpu: 0.0.40
codegen_flags: <defaults>
</compile_context>

<pallas_src>
import functools
import math

import jax
import jax.numpy as jnp
from jax.experimental import pallas as pl
from jax.experimental.pallas import tpu as pltpu


def _round_up(x, m):
    return ((x + m - 1) // m) * m


def word_embedding_gather_kernel(ids_ref,    # SMEM  (m_pad,) int32 (scalar prefetch)
                                 table_ref,  # HBM   (vocab, d_pad), memory_space=ANY
                                 o_ref,      # VMEM  (tm, d_pad) output tile
                                 rows_ref,   # VMEM  (2, tm, d_pad) gather scratch
                                 sem_ref,    # DMA semaphores, shape (2,)
                                 *, scale, tm):
    i = pl.program_id(0)
    num = pl.num_programs(0)
    slot = i % 2

    def issue_tile(tile_idx, dst_slot):
        base = tile_idx * tm

        @pl.loop(0, tm)
        def _issue(r):
            tok = ids_ref[base + r]
            pltpu.make_async_copy(
                table_ref.at[pl.ds(tok, 1), :],
                rows_ref.at[dst_slot, pl.ds(r, 1), :],
                sem_ref.at[dst_slot],
            ).start()

    # Prime the pipeline: issue this (first) tile's row gather.
    @pl.when(i == 0)
    def _prime():
        issue_tile(i, slot)

    # Double-buffer: issue the next tile's row gather into the other slot
    # before consuming the current one, so its DMAs overlap with this step's
    # waits / output writeback.
    @pl.when(i + 1 < num)
    def _prefetch_next():
        issue_tile(i + 1, 1 - slot)

    # Wait for this tile's TM row copies (all same-size, shared per-slot sem).
    @pl.loop(0, tm)
    def _wait(r):
        pltpu.make_async_copy(
            table_ref.at[pl.ds(0, 1), :],
            rows_ref.at[slot, pl.ds(r, 1), :],
            sem_ref.at[slot],
        ).wait()

    gathered = rows_ref[slot]  # (tm, d_pad)
    o_ref[...] = (gathered.astype(jnp.float32) * scale).astype(o_ref.dtype)


def word_embedding_forward(ids, table, *, tm=256):
    """ids: int32 [batch, seq]; table: [vocab, n_units].
    Returns [batch, seq, n_units] = table[ids] * sqrt(n_units)."""
    batch, seq = ids.shape
    vocab, n_units = table.shape
    scale = float(math.sqrt(n_units))
    itemsize = jnp.dtype(table.dtype).itemsize

    # Lane-dense output: pad the feature dim up to a multiple of 128.
    d_pad = _round_up(n_units, 128)
    if d_pad != n_units:
        table = jnp.pad(table, ((0, 0), (0, d_pad - n_units)))

    m = batch * seq
    # Row tile: multiple of 8 sublanes; shrink for tiny inputs.
    tm = max(8, min(_round_up(tm, 8), _round_up(m, 8)))
    num_blocks = pl.cdiv(m, tm)
    m_pad = num_blocks * tm

    ids_flat = ids.reshape(m).astype(jnp.int32)
    # nn.Embedding errors on out-of-range ids; clamp so the HBM row DMA can
    # never go out of bounds.  Pad rows look up row 0 and are sliced off.
    ids_flat = jnp.clip(ids_flat, 0, vocab - 1)
    if m_pad != m:
        ids_flat = jnp.pad(ids_flat, (0, m_pad - m))

    tile_bytes = tm * d_pad * itemsize
    # VMEM: double-buffered output tile + 2-slot gather scratch (+ headroom).
    vmem_limit = int(min(48 << 20, max(8 << 20, 8 * tile_bytes)))

    cost = pl.CostEstimate(
        flops=m_pad * d_pad,                         # scale multiply only
        transcendentals=0,
        bytes_accessed=(m_pad * 4                    # ids
                        + m_pad * d_pad * itemsize   # gathered table rows
                        + m_pad * d_pad * itemsize), # output
    )

    out2d = pl.pallas_call(
        functools.partial(word_embedding_gather_kernel, scale=scale, tm=tm),
        out_shape=jax.ShapeDtypeStruct((m_pad, d_pad), table.dtype),
        grid_spec=pltpu.PrefetchScalarGridSpec(
            num_scalar_prefetch=1,                   # ids -> SMEM
            grid=(num_blocks,),
            in_specs=[
                pl.BlockSpec(memory_space=pl.ANY),   # table stays in HBM
            ],
            out_specs=pl.BlockSpec((tm, d_pad), lambda i, ids: (i, 0)),
            scratch_shapes=[
                pltpu.VMEM((2, tm, d_pad), table.dtype),
                pltpu.SemaphoreType.DMA((2,)),
            ],
        ),
        compiler_params=pltpu.CompilerParams(
            # "arbitrary": the manual double-buffer primes tile 0 at step 0 and
            # carries DMA state across steps; a megacore split would break it.
            dimension_semantics=("arbitrary",),
            vmem_limit_bytes=vmem_limit,
        ),
        cost_estimate=cost,
    )(ids_flat, table)

    return out2d[:m, :n_units].reshape(batch, seq, n_units)


if __name__ == "__main__":
    key = jax.random.PRNGKey(0)
    k_tab, k_ids, k_tab2, k_ids2 = jax.random.split(key, 4)

    # Test 1: small, 128-aligned feature dim, single row tile.
    batch, seq = 2, 8
    vocab, n_units = 1024, 256
    table = jax.random.normal(k_tab, (vocab, n_units), jnp.float32) * 0.02
    ids = jax.random.randint(k_ids, (batch, seq), 0, vocab, dtype=jnp.int32)

    out = word_embedding_forward(ids, table)
    jax.block_until_ready(out)
    ref = table[ids] * math.sqrt(n_units)
    assert out.shape == (batch, seq, n_units)
    assert jnp.allclose(out, ref, atol=1e-5, rtol=1e-5)

    # Test 2: unaligned feature dim (padded to 128) + multiple row tiles, which
    # exercises the double-buffered cross-step gather.
    batch2, seq2 = 3, 50
    vocab2, n_units2 = 512, 80
    table2 = jax.random.normal(k_tab2, (vocab2, n_units2), jnp.float32) * 0.02
    ids2 = jax.random.randint(k_ids2, (batch2, seq2), 0, vocab2, dtype=jnp.int32)

    out2 = word_embedding_forward(ids2, table2, tm=64)
    jax.block_until_ready(out2)
    ref2 = table2[ids2] * math.sqrt(n_units2)
    assert out2.shape == (batch2, seq2, n_units2)
    assert jnp.allclose(out2, ref2, atol=1e-5, rtol=1e-5)

    print("KERNEL_OK")
</pallas_src>

<mosaic_0001>
module attributes {stable_mosaic.version = 11 : i64} {
  func.func @word_embedding_gather_kernel(%arg0: i32, %arg1: memref<16xi32, #tpu.memory_space<smem>>, %arg2: memref<1024x256xf32, #tpu.memory_space<any>>, %arg3: memref<16x256xf32, #tpu.memory_space<vmem>>, %arg4: memref<2x16x256xf32, #tpu.memory_space<vmem>>, %arg5: memref<2x!tpu.dma_semaphore, #tpu.memory_space<semaphore_mem>>) attributes {dimension_semantics = [#tpu.dimension_semantics<arbitrary>], iteration_bounds = array<i64: 1>, scalar_prefetch = 1 : i64, scratch_operands = 2 : i64, tpu.core_type = #tpu.core_type<tc>, window_params = [{}, {transform_indices = @transform_1, window_bounds = array<i64: 16, 256>}]} {
    %c2_i32 = arith.constant 2 : i32
    %c0_i32 = arith.constant 0 : i32
    %0 = arith.cmpi eq, %c2_i32, %c0_i32 : i32
    %c1_i32 = arith.constant 1 : i32
    %1 = arith.select %0, %c1_i32, %c2_i32 : i32
    %2 = arith.remsi %arg0, %1 : i32
    %c0_i32_0 = arith.constant 0 : i32
    %3 = arith.cmpi ne, %2, %c0_i32_0 : i32
    %c0_i32_1 = arith.constant 0 : i32
    %4 = arith.cmpi slt, %2, %c0_i32_1 : i32
    %c0_i32_2 = arith.constant 0 : i32
    %5 = arith.cmpi slt, %1, %c0_i32_2 : i32
    %6 = arith.xori %4, %5 : i1
    %7 = arith.andi %6, %3 : i1
    %8 = arith.addi %2, %1 : i32
    %9 = arith.select %7, %8, %2 : i32
    %c0_i32_3 = arith.constant 0 : i32
    %10 = arith.cmpi eq, %arg0, %c0_i32_3 : i32
    %11 = arith.extui %10 : i1 to i32
    %c0_i32_4 = arith.constant 0 : i32
    %12 = arith.cmpi ne, %11, %c0_i32_4 : i32
    scf.if %12 {
      %c16_i32_14 = arith.constant 16 : i32
      %24 = arith.muli %arg0, %c16_i32_14 : i32
      %c0_i32_15 = arith.constant 0 : i32
      %c16_i32_16 = arith.constant 16 : i32
      %25 = arith.addi %c0_i32_15, %c16_i32_16 : i32
      %c1_i32_17 = arith.constant 1 : i32
      scf.for %arg6 = %c0_i32_15 to %25 step %c1_i32_17  : i32 {
        %c1_i32_19 = arith.constant 1 : i32
        %26 = arith.muli %arg6, %c1_i32_19 : i32
        %c0_i32_20 = arith.constant 0 : i32
        %27 = arith.addi %c0_i32_20, %26 : i32
        %28 = arith.addi %24, %27 : i32
        %29 = arith.index_cast %28 : i32 to index
        %30 = memref.load %arg1[%29] : memref<16xi32, #tpu.memory_space<smem>>
        %c0_i32_21 = arith.constant 0 : i32
        %31 = tpu.memref_slice %arg2[%30, %c0_i32_21] : memref<1024x256xf32, #tpu.memory_space<any>> -> memref<1x256xf32, #tpu.memory_space<any>>
        %c0_i32_22 = arith.constant 0 : i32
        %32 = tpu.memref_slice %arg4[%9, %27, %c0_i32_22] : memref<2x16x256xf32, #tpu.memory_space<vmem>> -> memref<1x1x256xf32, #tpu.memory_space<vmem>>
        %33 = tpu.memref_squeeze %32 : memref<1x1x256xf32, #tpu.memory_space<vmem>> -> memref<1x256xf32, #tpu.memory_space<vmem>>
        %34 = tpu.memref_slice %arg5[%9] : memref<2x!tpu.dma_semaphore, #tpu.memory_space<semaphore_mem>> -> memref<1x!tpu.dma_semaphore, #tpu.memory_space<semaphore_mem>>
        %35 = tpu.memref_squeeze %34 : memref<1x!tpu.dma_semaphore, #tpu.memory_space<semaphore_mem>> -> memref<!tpu.dma_semaphore, #tpu.memory_space<semaphore_mem>>
        tpu.enqueue_dma source(%31 : memref<1x256xf32, #tpu.memory_space<any>>) target(%33 : memref<1x256xf32, #tpu.memory_space<vmem>>) target_semaphore(%35 : memref<!tpu.dma_semaphore, #tpu.memory_space<semaphore_mem>>)
      }
      %c16_i32_18 = arith.constant 16 : i32
    } else {
    }
    %c1_i32_5 = arith.constant 1 : i32
    %13 = arith.addi %arg0, %c1_i32_5 : i32
    %c1_i32_6 = arith.constant 1 : i32
    %14 = arith.cmpi slt, %13, %c1_i32_6 : i32
    %15 = arith.extui %14 : i1 to i32
    %c0_i32_7 = arith.constant 0 : i32
    %16 = arith.cmpi ne, %15, %c0_i32_7 : i32
    scf.if %16 {
      %c1_i32_14 = arith.constant 1 : i32
      %24 = arith.addi %arg0, %c1_i32_14 : i32
      %c1_i32_15 = arith.constant 1 : i32
      %25 = arith.subi %c1_i32_15, %9 : i32
      %c16_i32_16 = arith.constant 16 : i32
      %26 = arith.muli %24, %c16_i32_16 : i32
      %c0_i32_17 = arith.constant 0 : i32
      %c16_i32_18 = arith.constant 16 : i32
      %27 = arith.addi %c0_i32_17, %c16_i32_18 : i32
      %c1_i32_19 = arith.constant 1 : i32
      scf.for %arg6 = %c0_i32_17 to %27 step %c1_i32_19  : i32 {
        %c1_i32_21 = arith.constant 1 : i32
        %28 = arith.muli %arg6, %c1_i32_21 : i32
        %c0_i32_22 = arith.constant 0 : i32
        %29 = arith.addi %c0_i32_22, %28 : i32
        %30 = arith.addi %26, %29 : i32
        %31 = arith.index_cast %30 : i32 to index
        %32 = memref.load %arg1[%31] : memref<16xi32, #tpu.memory_space<smem>>
        %c0_i32_23 = arith.constant 0 : i32
        %33 = tpu.memref_slice %arg2[%32, %c0_i32_23] : memref<1024x256xf32, #tpu.memory_space<any>> -> memref<1x256xf32, #tpu.memory_space<any>>
        %c0_i32_24 = arith.constant 0 : i32
        %34 = tpu.memref_slice %arg4[%25, %29, %c0_i32_24] : memref<2x16x256xf32, #tpu.memory_space<vmem>> -> memref<1x1x256xf32, #tpu.memory_space<vmem>>
        %35 = tpu.memref_squeeze %34 : memref<1x1x256xf32, #tpu.memory_space<vmem>> -> memref<1x256xf32, #tpu.memory_space<vmem>>
        %36 = tpu.memref_slice %arg5[%25] : memref<2x!tpu.dma_semaphore, #tpu.memory_space<semaphore_mem>> -> memref<1x!tpu.dma_semaphore, #tpu.memory_space<semaphore_mem>>
        %37 = tpu.memref_squeeze %36 : memref<1x!tpu.dma_semaphore, #tpu.memory_space<semaphore_mem>> -> memref<!tpu.dma_semaphore, #tpu.memory_space<semaphore_mem>>
        tpu.enqueue_dma source(%33 : memref<1x256xf32, #tpu.memory_space<any>>) target(%35 : memref<1x256xf32, #tpu.memory_space<vmem>>) target_semaphore(%37 : memref<!tpu.dma_semaphore, #tpu.memory_space<semaphore_mem>>)
      }
      %c16_i32_20 = arith.constant 16 : i32
    } else {
    }
    %c0_i32_8 = arith.constant 0 : i32
    %c16_i32 = arith.constant 16 : i32
    %17 = arith.addi %c0_i32_8, %c16_i32 : i32
    %c1_i32_9 = arith.constant 1 : i32
    scf.for %arg6 = %c0_i32_8 to %17 step %c1_i32_9  : i32 {
      %c1_i32_14 = arith.constant 1 : i32
      %24 = arith.muli %arg6, %c1_i32_14 : i32
      %c0_i32_15 = arith.constant 0 : i32
      %25 = arith.addi %c0_i32_15, %24 : i32
      %c0_i32_16 = arith.constant 0 : i32
      %c0_i32_17 = arith.constant 0 : i32
      %26 = tpu.memref_slice %arg2[%c0_i32_16, %c0_i32_17] : memref<1024x256xf32, #tpu.memory_space<any>> -> memref<1x256xf32, #tpu.memory_space<any>>
      %c0_i32_18 = arith.constant 0 : i32
      %27 = tpu.memref_slice %arg4[%9, %25, %c0_i32_18] : memref<2x16x256xf32, #tpu.memory_space<vmem>> -> memref<1x1x256xf32, #tpu.memory_space<vmem>>
      %28 = tpu.memref_squeeze %27 : memref<1x1x256xf32, #tpu.memory_space<vmem>> -> memref<1x256xf32, #tpu.memory_space<vmem>>
      %29 = tpu.memref_slice %arg5[%9] : memref<2x!tpu.dma_semaphore, #tpu.memory_space<semaphore_mem>> -> memref<1x!tpu.dma_semaphore, #tpu.memory_space<semaphore_mem>>
      %30 = tpu.memref_squeeze %29 : memref<1x!tpu.dma_semaphore, #tpu.memory_space<semaphore_mem>> -> memref<!tpu.dma_semaphore, #tpu.memory_space<semaphore_mem>>
      tpu.wait_dma2 semaphore(%30 : memref<!tpu.dma_semaphore, #tpu.memory_space<semaphore_mem>>) src(%26 : memref<1x256xf32, #tpu.memory_space<any>>) dst(%28 : memref<1x256xf32, #tpu.memory_space<vmem>>)
    }
    %c16_i32_10 = arith.constant 16 : i32
    %18 = arith.index_cast %9 : i32 to index
    %c0 = arith.constant 0 : index
    %c0_11 = arith.constant 0 : index
    %19 = vector.load %arg4[%18, %c0, %c0_11] : memref<2x16x256xf32, #tpu.memory_space<vmem>>, vector<1x16x256xf32>
    %20 = vector.shape_cast %19 : vector<1x16x256xf32> to vector<16x256xf32>
    %cst = arith.constant 1.600000e+01 : f32
    %21 = vector.broadcast %cst : f32 to vector<16x256xf32>
    %22 = arith.mulf %20, %21 : vector<16x256xf32>
    %c0_12 = arith.constant 0 : index
    %c0_13 = arith.constant 0 : index
    %23 = vector.load %arg3[%c0_12, %c0_13] : memref<16x256xf32, #tpu.memory_space<vmem>>, vector<16x256xf32>
    tpu.vector_store %arg3[%c0_12, %c0_13], %22 {strides = array<i32>} : memref<16x256xf32, #tpu.memory_space<vmem>>, vector<16x256xf32>,
    return
  }
  func.func @transform_1(%arg0: i32, %arg1: memref<16xi32, #tpu.memory_space<smem>>) -> (i32, i32) {
    %c0_i32 = arith.constant 0 : i32
    %c0_i32_0 = arith.constant 0 : i32
    return %arg0, %c0_i32 : i32, i32
  }
}

</mosaic_0001>

<bundles_post_ra>
// kernel: tpu_custom_call.1
= control target key start
LH: loop header
LB: loop body
LE: loop exit
PB: predicated region body
PF: predicated region fallthrough
CT: control target
= control target key end

     0   :  { %s297_s12 = smov [#allocation5]   ;;  %s355_s0 = inlined_call_operand.hbm [shape: s32[16], index: 0, kind: input, shape index: {}]   ;;  %s356_s1 = inlined_call_operand.hbm [shape: f32[1024,256], index: 1, kind: input, shape index: {}]   ;;  %s357_s2 = inlined_call_operand.hbm [shape: f32[16,256], index: 2, kind: output, shape index: {}]  }
   0x1   :  { %s8_s11 = sshll.u32 %s355_s0, 4  ;;  %s9_s11 = int_to_ptr.hbm [resolvable:$true] %s8_s11 }
   0x2   :  { %11 = dma.hbm_to_smem %s9_s11, 16, %s297_s12, [#allocation4] }
   0x3   :  { %283 = dma.done.wait [#allocation4], 16 }
   0x4   :  { %284 = vsyncadd [#allocation4], 4294967280 }
   0x5   :  { %14 = sfence }
   0x6   :  { %15 = vsyncpa [#allocation7], 0  ;;  %s322_s13 = smov 0  }
   0x7 LB: > { %s36_s14 = sld [smem:[#allocation5 + %s291_s13]]  ;;  %s42_s15 = sshrl.u32 %s291_s13, 3  ;;  %s291_s13 = sphi %s322_s13, %s34_s13  }
   0x8   : > { %s43_s0 = sand.u32 7, %s291_s13   ;;  %s187_s16 = sshll.u32 %s42_s15, 4 }
   0x9   : > { %s45_s17 = sadd.s32 %s187_s16, %s43_s0  ;;  %s231_s4 = scalar_lea.hbm %s356_s1, 2048 }
   0xa   : > { %s48_s18 = scalar_lea.vmem [#allocation2], %s45_s17 }
   0xb   : > { %s330_s19 = sshll.u32 %s48_s18, 4  ;;  %s53_s19 = int_to_ptr.vmem [resolvable:$true] %s330_s19 }
   0xd   : > { %s37_s20 = sshrl.u32 %s36_s14, 3  ;;  %s38_s21 = sand.u32 7, %s36_s14  }
   0xe   : > { %s186_s22 = sshll.u32 %s37_s20, 4 }
   0xf   : > { %s40_s23 = sadd.s32 %s186_s22, %s38_s21 }
  0x10   : > { %s41_s26 = scalar_lea.hbm %s356_s1, %s40_s23 }
  0x11   : > { %s336_s27 = sshll.u32 %s41_s26, 4  ;;  %s51_s27 = int_to_ptr.hbm [resolvable:$true] %s336_s27 }
  0x12   : > { %s227_s28 = sshra.s32 %s51_s27, 4  ;;  %s228_s28 = int_to_ptr.hbm [resolvable:$true] %s227_s28 }
  0x13   : > { %s229_s29 = scalar_lea.hbm %s228_s28, 2  ;;  %p232_p1 = scmp.lt.s32.totalorder %s228_s28, %s356_s1 }
  0x14   : > { %p230_p0 = scmp.ne.s32.totalorder %s228_s28, %s229_s29  ;;  %p233_p2 = scmp.lt.s32.totalorder %s231_s4, %s229_s29 }
  0x16   : > { %p234_p3 = por %p233_p2, %p232_p1 }
  0x18   : > { %p235_p4 = pnand %p234_p3, %p230_p0 }
  0x1a   : > { %238 = shalt.err (!%p235_p4)  }
  0x1b   : > { %s239_s7 = sshra.s32 %s53_s19, 4  ;;  %s298_s9 = smov [#allocation2]   ;;  %s240_s7 = int_to_ptr.vmem [resolvable:$true] %s239_s7 }
  0x1c   : > { %s241_s8 = scalar_lea.vmem %s240_s7, 2  ;;  %s243_s10 = scalar_lea.vmem %s298_s9, 64 }
  0x1d   : > { %p242_p5 = scmp.ne.s32.totalorder %s240_s7, %s241_s8  ;;  %p244_p6 = scmp.lt.s32.totalorder %s240_s7, [#allocation2] }
  0x1e   : > { %p245_p7 = scmp.lt.s32.totalorder %s243_s10, %s241_s8 }
  0x20   : > { %p246_p8 = por %p245_p7, %p244_p6 }
  0x22   : > { %p247_p9 = pnand %p246_p8, %p242_p5 }
  0x24   : > { %250 = shalt.err (!%p247_p9)  }
  0x25   : > { %s299_s11 = smov 128   ;;  %s300_s12 = smov 1  }
  0x26   : > { %57 = dma.hbm_to_vmem [thread:$0]  %s51_s27, 32, %s53_s19, [#allocation3], %s299_s11, %s299_s11, %s300_s12 }
  0x27   : > { %s34_s13 = sadd.s32 1, %s291_s13  }
  0x28   : > { %p31_p10 = scmp.ge.s32.totalorder %s34_s13, 16  }
  0x29   :  { %s293_s14 = smov (%p31_p10), 0  }
  0x2a   :  { %33 = sbr.rel (!%p31_p10) target bundleno = 7 (0x7), region = 58 }
  0x2f LB: > { %285 = dma.done.wait [#allocation3], 32  ;;  %s295_s14 = sphi %s293_s14, %s99_s14  }
  0x30   : > { %286 = vsyncadd [#allocation3], 4294967264  ;;  %s99_s14 = sadd.s32 1, %s295_s14  }
  0x31   : > { %p96_p11 = scmp.ge.s32.totalorder %s99_s14, 16  }
  0x32   :  { %v107_v0 = vld [vmem:[#allocation2] sm:$0xff] (%p96_p11)  ;;  %v108_v1 = vld [vmem:[#allocation2 + $0x8] sm:$0xff] (%p96_p11)  ;;  %v109_v2 = vld [vmem:[#allocation2 + $0x10] sm:$0xff] (%p96_p11)  ;;  %s125_s16 = sshll.u32 (%p96_p11), %s357_s2, 4  ;;  %s301_s1 = smov (%p96_p11), [#allocation6]   ;;  %s126_s16 = int_to_ptr.hbm [resolvable:$true] %s125_s16 }
  0x33   :  { %98 = sbr.rel (!%p96_p11) target bundleno = 47 (0x2f), region = 80  ;;  %v111_v3 = vmul.f32 (%p96_p11), 16.0, %v107_v0  ;;  %v112_v4 = vmul.f32 (%p96_p11), 16.0, %v108_v1  ;;  %v113_v5 = vmul.f32 (%p96_p11), 16.0, %v109_v2  ;;  %v110_v6 = vld [vmem:[#allocation2 + $0x18] sm:$0xff] (%p96_p11)  ;;  %s123_s13 = sshll.u32 (%p96_p11), %s301_s1, 4  ;;  %s124_s13 = int_to_ptr.vmem [resolvable:$true] %s123_s13 }
  0x34   :  { %v114_v7 = vmul.f32 (%p96_p11), 16.0, %v110_v6  ;;  %s302_s17 = smov (%p96_p11), 256   ;;  %s303_s18 = smov (%p96_p11), 16  }
  0x35   :  { %115 = vst [vmem:[#allocation6] sm:$0xff] (%p96_p11), %v111_v3 }
  0x36   :  { %116 = vst [vmem:[#allocation6 + $0x8] sm:$0xff] (%p96_p11), %v112_v4 }
  0x37   :  { %117 = vst [vmem:[#allocation6 + $0x10] sm:$0xff] (%p96_p11), %v113_v5 }
  0x38   :  { %118 = vst [vmem:[#allocation6 + $0x18] sm:$0xff] %v114_v7 }
  0x39   :  { %131 = dma.vmem_to_hbm [thread:$0]  %s124_s13, 512, %s126_s16, [#allocation7], %s302_s17, %s302_s17, %s303_s18  }
  0x3a   :  { %287 = dma.done.wait [#allocation7], 512  }
  0x3b   :  { %288 = vsyncadd [#allocation7], 4294966784 }
  0x3c   :  { %136 = vsyncpa [#allocation7], 1 }
  0x3d   :  { %137 = vsyncmov [#allocation3] }
  0x40   :  { %s138_s2 = vpop.sfrf %137 }
  0x41   :  { %p191_p12 = scmp.ne.s32.totalorder %s138_s2, 0 }
  0x43   :  { %142 = shalt.err (%p191_p12)  }
  0x44   :  { %144 = vsyncmov [#allocation3 + $0x1] }
  0x47   :  { %s145_s19 = vpop.sfrf %144 }
  0x48   :  { %p192_p13 = scmp.ne.s32.totalorder %s145_s19, 0 }
  0x4a   :  { %149 = shalt.err (%p192_p13)  }

</bundles_post_ra>
